<compile_context>
chip_gen: v7x
topology: tpu7x:2x2x1
jax: 0.10.0
libtpu: 0.0.40
codegen_flags: <defaults>
</compile_context>

<pallas_src>
import functools

import jax
import jax.numpy as jnp
from jax.experimental import pallas as pl
from jax.experimental.pallas import tpu as pltpu


def _round_up(x, m):
    return ((x + m - 1) // m) * m


def _nll_loss_kernel(pred_ref, target_ref, out_ref, *, n_rows, block_rows):
    """Row-tiled mean NLL loss.

    pred_ref:   (TM, C) f32 VMEM  - log-probability tile
    target_ref: (TM, 1) i32 VMEM  - class-index tile
    out_ref:    (1, 1)  f32 SMEM  - scalar loss; resident accumulator across grid
    """
    i = pl.program_id(0)

    @pl.when(i == 0)
    def _init():
        out_ref[0, 0] = jnp.float32(0.0)

    pred = pred_ref[...]                                         # (TM, C)
    tgt = target_ref[...]                                        # (TM, 1)
    tm, c = pred.shape

    # One-hot gather along the class (lane) axis: pred[r, target[r]],
    # with a row-validity mask so padded rows of the last tile contribute 0.
    col_ids = jax.lax.broadcasted_iota(jnp.int32, (tm, c), 1)    # lane index
    row_ids = jax.lax.broadcasted_iota(jnp.int32, (tm, c), 0) + i * block_rows
    mask = (col_ids == tgt) & (row_ids < n_rows)
    partial = jnp.sum(jnp.where(mask, pred, jnp.float32(0.0)))   # sum_r pred[r, tgt[r]]

    out_ref[0, 0] += partial

    @pl.when(i == pl.num_programs(0) - 1)
    def _finalize():
        # mean reduction + negation; static multiply instead of a divide.
        out_ref[0, 0] = out_ref[0, 0] * jnp.float32(-1.0 / n_rows)


def get_loss(pred, target, trans_feat=None, *, block_rows=1024):
    """JAX/Pallas equivalent of the PyTorch get_loss module's forward."""
    del trans_feat  # unused, exactly as in the reference module
    pred = pred.astype(jnp.float32)
    target_2d = target.astype(jnp.int32).reshape(-1, 1)
    n, c = pred.shape

    # Row tile: multiple of 8 sublanes, capped by block_rows; class dim kept whole.
    tm = min(block_rows, _round_up(n, 8))
    grid = (pl.cdiv(n, tm),)

    kernel = functools.partial(_nll_loss_kernel, n_rows=n, block_rows=tm)

    loss = pl.pallas_call(
        kernel,
        out_shape=jax.ShapeDtypeStruct((1, 1), jnp.float32),
        grid=grid,
        in_specs=[
            pl.BlockSpec((tm, c), lambda i: (i, 0)),   # pred row tile
            pl.BlockSpec((tm, 1), lambda i: (i, 0)),   # target row tile
        ],
        out_specs=pl.BlockSpec((1, 1), lambda i: (0, 0), memory_space=pltpu.SMEM),
        compiler_params=pltpu.CompilerParams(dimension_semantics=("arbitrary",)),
    )(pred, target_2d)
    return loss[0, 0]


if __name__ == "__main__":
    key = jax.random.PRNGKey(0)
    k1, k2, k3, k4, k5 = jax.random.split(key, 5)

    # --- Test 1: classification-head shape (batch=8, classes=40) ---
    N, C = 8, 40
    logits = jax.random.normal(k1, (N, C), dtype=jnp.float32)
    pred = jax.nn.log_softmax(logits, axis=-1)     # log-probabilities, as nll_loss expects
    target = jax.random.randint(k2, (N,), 0, C, dtype=jnp.int32)
    trans_feat = jax.random.normal(k3, (N, 64, 64), dtype=jnp.float32)  # unused by the loss

    loss = get_loss(pred, target, trans_feat)
    loss = jax.block_until_ready(loss)
    ref = -jnp.mean(pred[jnp.arange(N), target])
    assert jnp.allclose(loss, ref, atol=1e-5, rtol=1e-5), (loss, ref)

    # --- Test 2: ragged N (not a multiple of the row tile) exercises grid + masking ---
    N2, C2, TM2 = 100, 40, 64
    logits2 = jax.random.normal(k4, (N2, C2), dtype=jnp.float32)
    pred2 = jax.nn.log_softmax(logits2, axis=-1)
    target2 = jax.random.randint(k5, (N2,), 0, C2, dtype=jnp.int32)

    loss2 = get_loss(pred2, target2, None, block_rows=TM2)
    loss2 = jax.block_until_ready(loss2)
    ref2 = -jnp.mean(pred2[jnp.arange(N2), target2])
    assert jnp.allclose(loss2, ref2, atol=1e-5, rtol=1e-5), (loss2, ref2)

    print("KERNEL_OK")
</pallas_src>

<mosaic_0001>
module attributes {stable_mosaic.version = 11 : i64} {
  func.func @_nll_loss_kernel(%arg0: i32, %arg1: memref<8x40xf32, #tpu.memory_space<vmem>>, %arg2: memref<8x1xi32, #tpu.memory_space<vmem>>, %arg3: memref<1x1xf32, #tpu.memory_space<smem>>) attributes {dimension_semantics = [#tpu.dimension_semantics<arbitrary>], iteration_bounds = array<i64: 1>, scalar_prefetch = 0 : i64, scratch_operands = 0 : i64, tpu.core_type = #tpu.core_type<tc>, window_params = [{transform_indices = @transform_0, window_bounds = array<i64: 8, 40>}, {transform_indices = @transform_1, window_bounds = array<i64: 8, 1>}, {transform_indices = @transform_2, window_bounds = array<i64: 1, 1>}]} {
    %c0_i32 = arith.constant 0 : i32
    %0 = arith.cmpi eq, %arg0, %c0_i32 : i32
    %1 = arith.extui %0 : i1 to i32
    %c0_i32_0 = arith.constant 0 : i32
    %2 = arith.cmpi ne, %1, %c0_i32_0 : i32
    scf.if %2 {
      %cst_12 = arith.constant 0.000000e+00 : f32
      %c0_13 = arith.constant 0 : index
      %c0_14 = arith.constant 0 : index
      %27 = memref.load %arg3[%c0_13, %c0_14] : memref<1x1xf32, #tpu.memory_space<smem>>
      memref.store %cst_12, %arg3[%c0_13, %c0_14] : memref<1x1xf32, #tpu.memory_space<smem>>
    } else {
    }
    %c0 = arith.constant 0 : index
    %c0_1 = arith.constant 0 : index
    %3 = vector.load %arg1[%c0, %c0_1] : memref<8x40xf32, #tpu.memory_space<vmem>>, vector<8x40xf32>
    %c0_2 = arith.constant 0 : index
    %c0_3 = arith.constant 0 : index
    %4 = vector.load %arg2[%c0_2, %c0_3] : memref<8x1xi32, #tpu.memory_space<vmem>>, vector<8x1xi32>
    %5 = tpu.iota {dimensions = array<i32: 1>} : vector<8x40xi32>
    %6 = tpu.iota {dimensions = array<i32: 0>} : vector<8x40xi32>
    %c8_i32 = arith.constant 8 : i32
    %7 = arith.muli %arg0, %c8_i32 : i32
    %8 = vector.broadcast %7 : i32 to vector<8x40xi32>
    %9 = arith.addi %6, %8 : vector<8x40xi32>
    %10 = vector.broadcast %4 : vector<8x1xi32> to vector<8x40xi32>
    %11 = arith.cmpi eq, %5, %10 : vector<8x40xi32>
    %c8_i32_4 = arith.constant 8 : i32
    %12 = vector.broadcast %c8_i32_4 : i32 to vector<8x40xi32>
    %13 = arith.cmpi slt, %9, %12 : vector<8x40xi32>
    %14 = arith.andi %11, %13 : vector<8x40xi1>
    %cst = arith.constant 0.000000e+00 : f32
    %15 = vector.broadcast %cst : f32 to vector<8x40xf32>
    %16 = arith.select %14, %3, %15 : vector<8x40xi1>, vector<8x40xf32>
    %17 = vector.shape_cast %16 : vector<8x40xf32> to vector<1x8x40xf32>
    %cst_5 = arith.constant dense<0.000000e+00> : vector<1xf32>
    %18 = vector.multi_reduction <add>, %17, %cst_5 [1, 2] : vector<1x8x40xf32> to vector<1xf32>
    %19 = vector.shape_cast %18 : vector<1xf32> to vector<1x1x1xf32>
    %20 = vector.extract %19[0, 0, 0] : f32 from vector<1x1x1xf32>
    %c0_6 = arith.constant 0 : index
    %c0_7 = arith.constant 0 : index
    %21 = memref.load %arg3[%c0_6, %c0_7] : memref<1x1xf32, #tpu.memory_space<smem>>
    %22 = arith.addf %21, %20 : f32
    %c0_8 = arith.constant 0 : index
    %c0_9 = arith.constant 0 : index
    %23 = memref.load %arg3[%c0_8, %c0_9] : memref<1x1xf32, #tpu.memory_space<smem>>
    memref.store %22, %arg3[%c0_8, %c0_9] : memref<1x1xf32, #tpu.memory_space<smem>>
    %c0_i32_10 = arith.constant 0 : i32
    %24 = arith.cmpi eq, %arg0, %c0_i32_10 : i32
    %25 = arith.extui %24 : i1 to i32
    %c0_i32_11 = arith.constant 0 : i32
    %26 = arith.cmpi ne, %25, %c0_i32_11 : i32
    scf.if %26 {
      %c0_12 = arith.constant 0 : index
      %c0_13 = arith.constant 0 : index
      %27 = memref.load %arg3[%c0_12, %c0_13] : memref<1x1xf32, #tpu.memory_space<smem>>
      %cst_14 = arith.constant -1.250000e-01 : f32
      %28 = arith.mulf %27, %cst_14 : f32
      %c0_15 = arith.constant 0 : index
      %c0_16 = arith.constant 0 : index
      %29 = memref.load %arg3[%c0_15, %c0_16] : memref<1x1xf32, #tpu.memory_space<smem>>
      memref.store %28, %arg3[%c0_15, %c0_16] : memref<1x1xf32, #tpu.memory_space<smem>>
    } else {
    }
    return
  }
  func.func @transform_0(%arg0: i32) -> (i32, i32) {
    %c0_i32 = arith.constant 0 : i32
    %c0_i32_0 = arith.constant 0 : i32
    return %arg0, %c0_i32 : i32, i32
  }
  func.func @transform_1(%arg0: i32) -> (i32, i32) {
    %c0_i32 = arith.constant 0 : i32
    %c0_i32_0 = arith.constant 0 : i32
    return %arg0, %c0_i32 : i32, i32
  }
  func.func @transform_2(%arg0: i32) -> (i32, i32) {
    %c0_i32 = arith.constant 0 : i32
    %c0_i32_0 = arith.constant 0 : i32
    %c0_i32_1 = arith.constant 0 : i32
    return %c0_i32, %c0_i32_0 : i32, i32
  }
}

</mosaic_0001>

<bundles_post_ra>
// kernel: tpu_custom_call.1
= control target key start
LH: loop header
LB: loop body
LE: loop exit
PB: predicated region body
PF: predicated region fallthrough
CT: control target
= control target key end

     0   :  { %s121_s0 = inlined_call_operand.vmem [shape: f32[8,40], index: 0, kind: input, shape index: {}]   ;;  %s122_s1 = inlined_call_operand.vmem [shape: s32[8,1], index: 1, kind: input, shape index: {}]   ;;  %s123_s2 = inlined_call_operand.hbm [shape: f32[1,1], index: 2, kind: output, shape index: {}]  }
   0x1   :  { %v19_v0 = vld [vmem:[%s122_s1] sm:$0xff] }
   0x2   :  { %7 = vsyncpa [#allocation3], 0  ;;  %v86_v1 = vmov 0   ;;  %v20_v2 = vlaneseq  ;;  %v18_v4 = vld [vmem:[%s121_s0] sm:$0xff]  ;;  %vm34_vm0 = vcmask 326656   ;;  %s74_s0 = scalar_lea.hbm %s123_s2, 16 }
   0x3   :  { %73 = vset.pattern.permute.xlu0 %v86_v1  ;;  %p75_p0 = scmp.ne.s32.totalorder %s123_s2, %s74_s0  ;;  %p78_p1 = scmp.lt.u32.totalorder %s74_s0, %s123_s2 }
   0x4   :  { %28 = vperm.xlu0 %73, %v19_v0   ;;  %v21_v3 = vand.u32 127, %v20_v2 }
   0x5   :  { %p80_p2 = pnand %p78_p1, %p75_p0 }
  0x83   :  { %v29_v5 = vpop.permute.xlu0 %28 }
  0x84   :  { %vm30_vm1 = vcmp.eq.s32.totalorder %v21_v3, %v29_v5 }
  0x85   :  { %v33_v6 = vsel %vm30_vm1, %v18_v4, 0.0 }
  0x86   :  { %v35_v7 = vsel %vm34_vm0, %v33_v6, 0.0 }
  0x87   :  { %36 = vadd.xlane.f32.xlu0 %v35_v7 }
 0x114   :  { %v37_v8 = vpop.xlane.xlu0 %36 }
 0x115   :  { %v38_v9 = vrot.slane %v37_v8, 4 }
 0x117   :  { %v39_v10 = vadd.f32 %v38_v9, %v37_v8 }
 0x119   :  { %v40_v11 = vrot.slane %v39_v10, 2 }
 0x11b   :  { %v41_v12 = vadd.f32 %v40_v11, %v39_v10 }
 0x11d   :  { %v42_v13 = vrot.slane %v41_v12, 1 }
 0x11f   :  { %v43_v14 = vadd.f32 %v42_v13, %v41_v12 }
 0x121   :  { %68 = vpush %v43_v14 }
 0x152   :  { %s69_s1 = spop %68 }
 0x153   :  { %s53_s13 = smul.f32 -0.125, %s69_s1 }
 0x155   :  { %54 = sst [smem:[#allocation2]] %s53_s13 }
 0x156   :  { %83 = shalt.err (!%p80_p2)
}
 0x157   :  { %s87_s20 = smov [#allocation2]  }
 0x158   :  { %62 = dma.smem_to_hbm %s87_s20, 16, %s123_s2, [#allocation3]  }
 0x159   :  { %84 = dma.done.wait [#allocation3], 16  }
 0x15a   :  { %85 = vsyncadd [#allocation3], 4294967280 }
 0x15b   :  { %66 = sfence }
 0x15c   :  { %67 = vsyncpa [#allocation3], 1 }

</bundles_post_ra>
